<compile_context>
chip_gen: v7x
topology: tpu7x:2x2x1
jax: 0.10.0
libtpu: 0.0.40
codegen_flags: <defaults>
</compile_context>

<pallas_src>
import functools

import jax
import jax.numpy as jnp
from jax.experimental import pallas as pl
from jax.experimental.pallas import tpu as pltpu

LANES = 128
SUBLANES = 8


def _combined_loss_kernel(pred_ref, tgt_ref, out_ref, *, alpha, beta,
                          n_true, tile_rows, steps_per_core):
    """Accumulate alpha*|d| + beta*d^2 into a per-core (1,8,128) partial."""
    c = pl.program_id(0)          # core / parallel axis
    i = pl.program_id(1)          # reduction axis (sequential)

    @pl.when(i == 0)
    def _():
        out_ref[...] = jnp.zeros_like(out_ref)

    d = pred_ref[...].astype(jnp.float32) - tgt_ref[...].astype(jnp.float32)

    # Mask the ragged / out-of-bounds tail BEFORE abs/square: contents of the
    # padded region of a block are undefined. Uses the LOGICAL block position
    # (c * steps_per_core + i), so clamped duplicate tail blocks also mask to 0.
    # NOTE: flat index is int32 -> fine for < 2^31 elements.
    row = jax.lax.broadcasted_iota(jnp.int32, (tile_rows, LANES), 0)
    col = jax.lax.broadcasted_iota(jnp.int32, (tile_rows, LANES), 1)
    flat = ((c * steps_per_core + i) * tile_rows + row) * LANES + col
    d = jnp.where(flat < n_true, d, 0.0)

    contrib = alpha * jnp.abs(d) + beta * (d * d)
    # VPU-only partial reduce: (tile_rows,128) -> (8,128). The full cross-lane
    # reduction and the 1/N mean are done once, in the wrapper.
    partial = contrib.reshape(tile_rows // SUBLANES, SUBLANES, LANES).sum(axis=0)
    out_ref[...] += partial[None, :, :]


def _sublane_multiple(dtype):
    itemsize = jnp.dtype(dtype).itemsize
    return SUBLANES * max(1, 4 // itemsize)   # 8 for f32, 16 for bf16, 32 for i8


def combined_loss(pred, target, alpha=0.7, beta=0.3, block_rows=2048,
                  num_cores=2):
    """alpha * mean(|pred - target|) + beta * mean((pred - target)^2)."""
    assert pred.shape == target.shape, "pred/target must have identical shapes"
    n_true = int(pred.size)
    assert n_true > 0

    # Flatten to lane-dense (rows, 128) in the ORIGINAL dtype.
    p = jnp.ravel(pred)
    t = jnp.ravel(target)
    if n_true % LANES != 0:
        # Minimal (<128 element) pad only when the size is not lane-aligned.
        pad = LANES - n_true % LANES
        p = jnp.pad(p, (0, pad))
        t = jnp.pad(t, (0, pad))
    rows = p.size // LANES
    p = p.reshape(rows, LANES)
    t = t.reshape(rows, LANES)

    # Tile rows: as large as requested, rounded to the dtype's sublane packing.
    sub = max(_sublane_multiple(p.dtype), _sublane_multiple(t.dtype))
    tile_rows = min(block_rows, rows)
    tile_rows = max(sub, pl.cdiv(tile_rows, sub) * sub)

    steps_total = pl.cdiv(rows, tile_rows)
    ncores = num_cores if steps_total >= num_cores else 1
    spc = pl.cdiv(steps_total, ncores)          # reduction steps per core

    def in_map(c, i):
        # Clamp so no block start is fully out of bounds; the in-kernel mask
        # (keyed on the logical index) zeroes any duplicated/ragged tail.
        b = c * spc + i
        return (jnp.minimum(b, steps_total - 1), 0)

    kernel = functools.partial(
        _combined_loss_kernel,
        alpha=float(alpha),
        beta=float(beta),
        n_true=n_true,
        tile_rows=tile_rows,
        steps_per_core=spc,
    )

    out = pl.pallas_call(
        kernel,
        out_shape=jax.ShapeDtypeStruct((ncores, SUBLANES, LANES), jnp.float32),
        grid_spec=pltpu.PrefetchScalarGridSpec(
            num_scalar_prefetch=0,
            grid=(ncores, spc),
            in_specs=[
                pl.BlockSpec((tile_rows, LANES), in_map),
                pl.BlockSpec((tile_rows, LANES), in_map),
            ],
            out_specs=pl.BlockSpec((1, SUBLANES, LANES), lambda c, i: (c, 0, 0)),
        ),
        compiler_params=pltpu.CompilerParams(
            dimension_semantics=("parallel", "arbitrary"),
        ),
    )(p, t)

    # Single final cross-lane/sublane reduce + mean (alpha/beta already folded
    # in per-element inside the kernel).
    return jnp.sum(out) * (1.0 / n_true)


if __name__ == "__main__":
    key = jax.random.PRNGKey(0)
    k_pred, k_tgt = jax.random.split(key)

    # Small shapes consistent with a crowd-counting density map: NCHW.
    pred = jax.random.normal(k_pred, (2, 4, 16, 16), dtype=jnp.float32)
    target = jax.random.normal(k_tgt, (2, 4, 16, 16), dtype=jnp.float32)

    loss = combined_loss(pred, target, alpha=0.7, beta=0.3)
    loss = jax.block_until_ready(loss)

    # Pure-JAX reference check.
    d = pred - target
    ref = 0.7 * jnp.mean(jnp.abs(d)) + 0.3 * jnp.mean(d * d)
    assert jnp.allclose(loss, ref, rtol=1e-5, atol=1e-6), (loss, ref)

    print("KERNEL_OK")
</pallas_src>

<mosaic_0001>
module attributes {stable_mosaic.version = 11 : i64} {
  func.func @_combined_loss_kernel(%arg0: i32, %arg1: i32, %arg2: memref<16x128xf32, #tpu.memory_space<vmem>>, %arg3: memref<16x128xf32, #tpu.memory_space<vmem>>, %arg4: memref<1x8x128xf32, #tpu.memory_space<vmem>>) attributes {dimension_semantics = [#tpu.dimension_semantics<parallel>, #tpu.dimension_semantics<arbitrary>], iteration_bounds = array<i64: 1, 1>, scalar_prefetch = 0 : i64, scratch_operands = 0 : i64, tpu.core_type = #tpu.core_type<tc>, window_params = [{transform_indices = @transform_0, window_bounds = array<i64: 16, 128>}, {transform_indices = @transform_1, window_bounds = array<i64: 16, 128>}, {transform_indices = @transform_2, window_bounds = array<i64: 1, 8, 128>}]} {
    %c0_i32 = arith.constant 0 : i32
    %0 = arith.cmpi eq, %arg1, %c0_i32 : i32
    %1 = arith.extui %0 : i1 to i32
    %c0_i32_0 = arith.constant 0 : i32
    %2 = arith.cmpi ne, %1, %c0_i32_0 : i32
    scf.if %2 {
      %cst_13 = arith.constant 0.000000e+00 : f32
      %33 = vector.broadcast %cst_13 : f32 to vector<1x8x128xf32>
      %c0_14 = arith.constant 0 : index
      %c0_15 = arith.constant 0 : index
      %c0_16 = arith.constant 0 : index
      %34 = vector.load %arg4[%c0_14, %c0_15, %c0_16] : memref<1x8x128xf32, #tpu.memory_space<vmem>>, vector<1x8x128xf32>
      tpu.vector_store %arg4[%c0_14, %c0_15, %c0_16], %33 {strides = array<i32>} : memref<1x8x128xf32, #tpu.memory_space<vmem>>, vector<1x8x128xf32>,
    } else {
    }
    %c0 = arith.constant 0 : index
    %c0_1 = arith.constant 0 : index
    %3 = vector.load %arg2[%c0, %c0_1] : memref<16x128xf32, #tpu.memory_space<vmem>>, vector<16x128xf32>
    %c0_2 = arith.constant 0 : index
    %c0_3 = arith.constant 0 : index
    %4 = vector.load %arg3[%c0_2, %c0_3] : memref<16x128xf32, #tpu.memory_space<vmem>>, vector<16x128xf32>
    %5 = arith.subf %3, %4 : vector<16x128xf32>
    %6 = tpu.iota {dimensions = array<i32: 0>} : vector<16x128xi32>
    %7 = tpu.iota {dimensions = array<i32: 1>} : vector<16x128xi32>
    %c1_i32 = arith.constant 1 : i32
    %8 = arith.muli %arg0, %c1_i32 : i32
    %9 = arith.addi %8, %arg1 : i32
    %c16_i32 = arith.constant 16 : i32
    %10 = arith.muli %9, %c16_i32 : i32
    %11 = vector.broadcast %10 : i32 to vector<16x128xi32>
    %12 = arith.addi %11, %6 : vector<16x128xi32>
    %c128_i32 = arith.constant 128 : i32
    %13 = vector.broadcast %c128_i32 : i32 to vector<16x128xi32>
    %14 = arith.muli %12, %13 : vector<16x128xi32>
    %15 = arith.addi %14, %7 : vector<16x128xi32>
    %c2048_i32 = arith.constant 2048 : i32
    %16 = vector.broadcast %c2048_i32 : i32 to vector<16x128xi32>
    %17 = arith.cmpi slt, %15, %16 : vector<16x128xi32>
    %cst = arith.constant 0.000000e+00 : f32
    %18 = vector.broadcast %cst : f32 to vector<16x128xf32>
    %19 = arith.select %17, %5, %18 : vector<16x128xi1>, vector<16x128xf32>
    %20 = math.absf %19 : vector<16x128xf32>
    %cst_4 = arith.constant 0.699999988 : f32
    %21 = vector.broadcast %cst_4 : f32 to vector<16x128xf32>
    %22 = arith.mulf %21, %20 : vector<16x128xf32>
    %23 = arith.mulf %19, %19 : vector<16x128xf32>
    %cst_5 = arith.constant 3.000000e-01 : f32
    %24 = vector.broadcast %cst_5 : f32 to vector<16x128xf32>
    %25 = arith.mulf %24, %23 : vector<16x128xf32>
    %26 = arith.addf %22, %25 : vector<16x128xf32>
    %27 = vector.shape_cast %26 : vector<16x128xf32> to vector<2x8x128xf32>
    %cst_6 = arith.constant dense<0.000000e+00> : vector<8x128xf32>
    %28 = vector.multi_reduction <add>, %27, %cst_6 [0] : vector<2x8x128xf32> to vector<8x128xf32>
    %c0_7 = arith.constant 0 : index
    %c0_8 = arith.constant 0 : index
    %c0_9 = arith.constant 0 : index
    %29 = vector.load %arg4[%c0_7, %c0_8, %c0_9] : memref<1x8x128xf32, #tpu.memory_space<vmem>>, vector<1x8x128xf32>
    %30 = vector.shape_cast %28 : vector<8x128xf32> to vector<1x8x128xf32>
    %31 = arith.addf %29, %30 : vector<1x8x128xf32>
    %c0_10 = arith.constant 0 : index
    %c0_11 = arith.constant 0 : index
    %c0_12 = arith.constant 0 : index
    %32 = vector.load %arg4[%c0_10, %c0_11, %c0_12] : memref<1x8x128xf32, #tpu.memory_space<vmem>>, vector<1x8x128xf32>
    tpu.vector_store %arg4[%c0_10, %c0_11, %c0_12], %31 {strides = array<i32>} : memref<1x8x128xf32, #tpu.memory_space<vmem>>, vector<1x8x128xf32>,
    return
  }
  func.func @transform_0(%arg0: i32, %arg1: i32) -> (i32, i32) {
    %c1_i32 = arith.constant 1 : i32
    %0 = arith.muli %arg0, %c1_i32 : i32
    %1 = arith.addi %0, %arg1 : i32
    %c0_i32 = arith.constant 0 : i32
    %2 = arith.minsi %1, %c0_i32 : i32
    %c0_i32_0 = arith.constant 0 : i32
    %c0_i32_1 = arith.constant 0 : i32
    return %2, %c0_i32_0 : i32, i32
  }
  func.func @transform_1(%arg0: i32, %arg1: i32) -> (i32, i32) {
    %c1_i32 = arith.constant 1 : i32
    %0 = arith.muli %arg0, %c1_i32 : i32
    %1 = arith.addi %0, %arg1 : i32
    %c0_i32 = arith.constant 0 : i32
    %2 = arith.minsi %1, %c0_i32 : i32
    %c0_i32_0 = arith.constant 0 : i32
    %c0_i32_1 = arith.constant 0 : i32
    return %2, %c0_i32_0 : i32, i32
  }
  func.func @transform_2(%arg0: i32, %arg1: i32) -> (i32, i32, i32) {
    %c0_i32 = arith.constant 0 : i32
    %c0_i32_0 = arith.constant 0 : i32
    %c0_i32_1 = arith.constant 0 : i32
    return %arg0, %c0_i32, %c0_i32_0 : i32, i32, i32
  }
}

</mosaic_0001>

<bundles_post_ra>
// kernel: tpu_custom_call.1
= control target key start
LH: loop header
LB: loop body
LE: loop exit
PB: predicated region body
PF: predicated region fallthrough
CT: control target
= control target key end

     0   :  { %7 = vsyncpa [#allocation3], 0  ;;  %s257_s0 = inlined_call_operand.hbm [shape: f32[16,128], index: 0, kind: input, shape index: {}]   ;;  %s258_s1 = inlined_call_operand.hbm [shape: f32[16,128], index: 1, kind: input, shape index: {}]   ;;  %s259_s2 = inlined_call_operand.hbm [shape: f32[1,8,128], index: 2, kind: output, shape index: {}]  }
   0x1   :  { %8 = vsyncpa [#allocation6], 0 }
   0x2   :  { %9 = vsyncpa [#allocation4], 0  ;;  %s201_s9 = smov [#allocation2]   ;;  %s129_s13 = scalar_lea.hbm %s257_s0, 256 }
   0x3   :  { %s21_s10 = sshll.u32 %s201_s9, 4  ;;  %p130_p0 = scmp.ne.s32.totalorder %s257_s0, %s129_s13  ;;  %s22_s10 = int_to_ptr.vmem [resolvable:$true] %s21_s10 }
   0x4   :  { %p133_p1 = scmp.lt.u32.totalorder %s129_s13, %s257_s0 }
   0x6   :  { %p135_p2 = pnand %p133_p1, %p130_p0 }
   0x8   :  { %138 = shalt.err (!%p135_p2)
}
   0x9   :  { %s139_s18 = scalar_lea.vmem %s22_s10, 256  ;;  %p144_p4 = scmp.lt.s32.totalorder %s22_s10, %s22_s10 }
   0xa   :  { %p140_p3 = scmp.ne.s32.totalorder %s22_s10, %s139_s18  ;;  %p145_p5 = scmp.lt.s32.totalorder %s139_s18, %s139_s18 }
   0xc   :  { %p146_p6 = por %p145_p5, %p144_p4 }
   0xe   :  { %p147_p7 = pnand %p146_p6, %p140_p3 }
  0x10   :  { %150 = shalt.err (!%p147_p7)
}
  0x11   :  { %s202_s19 = smov 128   ;;  %s203_s20 = smov 8  }
  0x12   :  { %27 = dma.hbm_to_vmem [thread:$0]  %s257_s0, 256, %s22_s10, [#allocation3], %s202_s19, %s202_s19, %s203_s20  }
  0x13   :  { %s204_s23 = smov [#allocation5]   ;;  %s151_s27 = scalar_lea.hbm %s258_s1, 256 }
  0x14   :  { %s39_s24 = sshll.u32 %s204_s23, 4  ;;  %p152_p8 = scmp.ne.s32.totalorder %s258_s1, %s151_s27  ;;  %s40_s24 = int_to_ptr.vmem [resolvable:$true] %s39_s24 }
  0x15   :  { %p155_p9 = scmp.lt.u32.totalorder %s151_s27, %s258_s1 }
  0x17   :  { %p157_p10 = pnand %p155_p9, %p152_p8 }
  0x19   :  { %160 = shalt.err (!%p157_p10)
}
  0x1a   :  { %s161_s4 = scalar_lea.vmem %s40_s24, 256  ;;  %p166_p12 = scmp.lt.s32.totalorder %s40_s24, %s40_s24 }
  0x1b   :  { %p162_p11 = scmp.ne.s32.totalorder %s40_s24, %s161_s4  ;;  %p167_p13 = scmp.lt.s32.totalorder %s161_s4, %s161_s4 }
  0x1d   :  { %p168_p0 = por %p167_p13, %p166_p12 }
  0x1f   :  { %p169_p1 = pnand %p168_p0, %p162_p11 }
  0x21   :  { %172 = shalt.err (!%p169_p1)
}
  0x22   :  { %45 = dma.hbm_to_vmem [thread:$0]  %s258_s1, 256, %s40_s24, [#allocation6], %s202_s19, %s202_s19, %s203_s20  }
  0x23   :  { %195 = dma.done.wait [#allocation3], 256  }
  0x24   :  { %196 = vsyncadd [#allocation3], 4294967040 }
  0x25   :  { %197 = dma.done.wait [#allocation6], 256  }
  0x26   :  { %198 = vsyncadd [#allocation6], 4294967040  ;;  %v71_v0 = vlaneseq  ;;  %v65_v7 = vld [vmem:[#allocation2] sm:$0xff]  ;;  %v66_v8 = vld [vmem:[#allocation2 + $0x8] sm:$0xff]  ;;  %s205_s1 = smov [#allocation7]  }
  0x27   :  { %v67_v9 = vld [vmem:[#allocation5] sm:$0xff]  ;;  %v68_v10 = vld [vmem:[#allocation5 + $0x8] sm:$0xff]  ;;  %s109_s6 = sshll.u32 %s205_s1, 4  ;;  %s110_s6 = int_to_ptr.vmem [resolvable:$true] %s109_s6 }
  0x28   :  { %v72_v1 = vshrl.u32 %v71_v0, 7  ;;  %v75_v2 = vand.u32 127, %v71_v0  ;;  %v69_v11 = vsub.f32 %v65_v7, %v67_v9  ;;  %v70_v13 = vsub.f32 %v66_v8, %v68_v10  ;;  %s173_s7 = scalar_lea.vmem %s110_s6, 128  ;;  %p178_p3 = scmp.lt.s32.totalorder %s110_s6, %s110_s6 }
  0x29   :  { %p174_p2 = scmp.ne.s32.totalorder %s110_s6, %s173_s7  ;;  %p179_p4 = scmp.lt.s32.totalorder %s173_s7, %s173_s7 }
  0x2a   :  { %v73_v3 = vadd.s32 8, %v72_v1  ;;  %v81_v4 = vmul.u32 128, %v72_v1 }
  0x2b   :  { %p180_p5 = por %p179_p4, %p178_p3 }
  0x2c   :  { %v82_v5 = vmul.u32 128, %v73_v3  ;;  %v83_v6 = vadd.s32 %v81_v4, %v75_v2 }
  0x2d   :  { %p181_p6 = pnand %p180_p5, %p174_p2 }
  0x2e   :  { %v84_v12 = vadd.s32 %v82_v5, %v75_v2  ;;  %vm85_vm0 = vcmp.lt.s32.totalorder %v83_v6, 2048 }
  0x2f   :  { %v87_v14 = vsel %vm85_vm0, %v69_v11, 0.0 }
  0x30   :  { %vm86_vm1 = vcmp.lt.s32.totalorder %v84_v12, 2048  ;;  %v89_v16 = vand.u32 2147483647, %v87_v14  ;;  %v93_v17 = vmul.f32 %v87_v14, %v87_v14 }
  0x31   :  { %v88_v15 = vsel %vm86_vm1, %v70_v13, 0.0 }
  0x32   :  { %v90_v18 = vand.u32 2147483647, %v88_v15  ;;  %v94_v19 = vmul.f32 %v88_v15, %v88_v15  ;;  %v91_v20 = vmul.f32 0.7, %v89_v16  ;;  %v95_v21 = vmul.f32 0.3, %v93_v17 }
  0x34   :  { %v92_v22 = vmul.f32 0.7, %v90_v18  ;;  %v96_v23 = vmul.f32 0.3, %v94_v19  ;;  %v97_v24 = vadd.f32 %v95_v21, %v91_v20 }
  0x36   :  { %v98_v25 = vadd.f32 %v96_v23, %v92_v22 }
  0x38   :  { %v99_v26 = vadd.f32 %v98_v25, %v97_v24 }
  0x3a   :  { %102 = vst [vmem:[#allocation7] sm:$0xff] %v99_v26 }
  0x3b   :  { %184 = shalt.err (!%p181_p6)
}
  0x3c   :  { %s185_s10 = scalar_lea.hbm %s259_s2, 128 }
  0x3d   :  { %p186_p7 = scmp.ne.s32.totalorder %s259_s2, %s185_s10  ;;  %p189_p8 = scmp.lt.u32.totalorder %s185_s10, %s259_s2 }
  0x3f   :  { %p191_p9 = pnand %p189_p8, %p186_p7 }
  0x41   :  { %194 = shalt.err (!%p191_p9)
}
  0x42   :  { %112 = dma.vmem_to_hbm [thread:$0]  %s110_s6, 128, %s259_s2, [#allocation4]  }
  0x43   :  { %199 = dma.done.wait [#allocation4], 128  }
  0x44   :  { %200 = vsyncadd [#allocation4], 4294967168 }
  0x45   :  { %116 = vsyncpa [#allocation3], 1 }
  0x46   :  { %117 = vsyncpa [#allocation6], 1 }
  0x47   :  { %118 = vsyncpa [#allocation4], 1 }

</bundles_post_ra>
